<compile_context>
chip_gen: v5e
topology: v5e:2x2
jax: 0.10.0
libtpu: 0.0.40
codegen_flags: <defaults>
</compile_context>

<pallas_src>
import jax
import jax.numpy as jnp
from jax import lax
from jax.experimental import pallas as pl
from jax.experimental.pallas import tpu as pltpu  # noqa: F401  (kept for parity)

EPS = 1e-5
LANE = 128


def _bn_train(h, n_rows):
    """Training-mode BatchNorm normalization with one-pass statistics."""
    inv_n = 1.0 / n_rows
    s = jnp.sum(h, axis=0, keepdims=True)
    ss = jnp.sum(h * h, axis=0, keepdims=True)
    mean = s * inv_n
    var = jnp.maximum(ss * inv_n - mean * mean, 0.0)   # guard tiny negative round-off
    return (h - mean) * lax.rsqrt(var + EPS)


def pooler_kernel(x_ref, w1_ref, gb_ref, w2_ref, o_ref):
    # Whole batch fits in one VMEM tile: fuse matmul -> BN -> ReLU -> matmul -> BN.
    n = x_ref.shape[0]                      # static
    x = x_ref[...]                          # (N, in_dim), already f32

    # Linear 1 (no bias): (N, in) @ (in, Hp) -> (N, Hp)  (Hp = lane-padded 2H)
    h1 = jnp.dot(x, w1_ref[...], preferred_element_type=jnp.float32)

    # BatchNorm1d(2H), affine=True (gamma/beta packed in one (2, Hp) operand)
    gb = gb_ref[...]
    gamma = gb[0:1, :]
    beta = gb[1:2, :]
    h1 = _bn_train(h1, n) * gamma + beta

    # ReLU
    h1 = jnp.maximum(h1, 0.0)

    # Linear 2 (no bias): (N, Hp) @ (Hp, Op) -> (N, Op)  (Op = lane-padded H)
    h2 = jnp.dot(h1, w2_ref[...], preferred_element_type=jnp.float32)

    # BatchNorm1d(H), affine=False; lane-dense full-width store.
    o_ref[...] = _bn_train(h2, n).astype(o_ref.dtype)


def prepare_pooler_params(w1, gamma1, beta1, w2, lane=LANE):
    """One-time (parameter-init) prep.

    w1: (2H, H) PyTorch layout; w2: (H, 2H) PyTorch layout.
    Returns lane-padded, pre-transposed (in, out) weights and packed BN1 params.
    Padded rows/cols are zero, which keeps the fused forward exactly equivalent.
    """
    hidden_dim, in_dim = w1.shape
    out_dim = w2.shape[0]
    hp = max(lane, pl.cdiv(hidden_dim, lane) * lane)
    op = max(lane, pl.cdiv(out_dim, lane) * lane)

    w1_t = jnp.zeros((in_dim, hp), jnp.float32).at[:, :hidden_dim].set(w1.T)
    w2_t = jnp.zeros((hp, op), jnp.float32).at[:hidden_dim, :out_dim].set(w2.T)
    gb = (jnp.zeros((2, hp), jnp.float32)
          .at[0, :hidden_dim].set(gamma1)
          .at[1, :hidden_dim].set(beta1))
    return w1_t, gb, w2_t, out_dim


def two_layer_pooler(x, w1_t, gb, w2_t, *, out_dim):
    """x: (N, H) f32. Prepared params from prepare_pooler_params()."""
    n, in_dim = x.shape
    hp = w1_t.shape[1]
    op = w2_t.shape[1]

    full = lambda shape: pl.BlockSpec(shape, lambda: (0,) * len(shape))
    out = pl.pallas_call(
        pooler_kernel,
        out_shape=jax.ShapeDtypeStruct((n, op), jnp.float32),
        in_specs=[
            full((n, in_dim)),     # x
            full((in_dim, hp)),    # W1 (pre-transposed, lane-padded)
            full((2, hp)),         # [gamma1; beta1]
            full((hp, op)),        # W2 (pre-transposed, lane-padded)
        ],
        out_specs=full((n, op)),
    )(x, w1_t, gb, w2_t)
    return out[:, :out_dim]       # drop zero-padded lanes


def reference(x, w1, gamma1, beta1, w2):
    h1 = x @ w1.T
    m1 = h1.mean(0, keepdims=True)
    v1 = ((h1 - m1) ** 2).mean(0, keepdims=True)
    h1 = (h1 - m1) / jnp.sqrt(v1 + EPS) * gamma1 + beta1
    h1 = jnp.maximum(h1, 0.0)
    h2 = h1 @ w2.T
    m2 = h2.mean(0, keepdims=True)
    v2 = ((h2 - m2) ** 2).mean(0, keepdims=True)
    return (h2 - m2) / jnp.sqrt(v2 + EPS)


if __name__ == "__main__":
    hidden_size = 32            # config.hidden_size
    hidden_dim = hidden_size * 2
    batch = 8

    key = jax.random.PRNGKey(0)
    kx, kw1, kw2 = jax.random.split(key, 3)

    x = jax.random.normal(kx, (batch, hidden_size), dtype=jnp.float32)
    # PyTorch shapes: Linear weight is (out, in)
    w1 = jax.random.normal(kw1, (hidden_dim, hidden_size), dtype=jnp.float32) * 0.1
    w2 = jax.random.normal(kw2, (hidden_size, hidden_dim), dtype=jnp.float32) * 0.1
    gamma1 = jnp.ones((hidden_dim,), dtype=jnp.float32)   # BN1 affine defaults
    beta1 = jnp.zeros((hidden_dim,), dtype=jnp.float32)   # BN2 affine=False -> no params

    # One-time parameter prep (transpose + lane-pad + pack) — NOT in the call path.
    w1_t, gb, w2_t, out_dim = prepare_pooler_params(w1, gamma1, beta1, w2)
    jax.block_until_ready((w1_t, gb, w2_t))

    pooler = jax.jit(two_layer_pooler, static_argnames=("out_dim",))
    out = pooler(x, w1_t, gb, w2_t, out_dim=out_dim)
    jax.block_until_ready(out)

    ref = reference(x, w1, gamma1, beta1, w2)
    assert out.shape == (batch, hidden_size)
    assert jnp.allclose(out, ref, atol=1e-4, rtol=1e-4), "mismatch vs reference"

    print("KERNEL_OK")
</pallas_src>

<mosaic_0001>
module attributes {stable_mosaic.version = 11 : i64} {
  func.func @pooler_kernel(%arg0: memref<8x32xf32, #tpu.memory_space<vmem>>, %arg1: memref<32x128xf32, #tpu.memory_space<vmem>>, %arg2: memref<2x128xf32, #tpu.memory_space<vmem>>, %arg3: memref<128x128xf32, #tpu.memory_space<vmem>>, %arg4: memref<8x128xf32, #tpu.memory_space<vmem>>) attributes {dimension_semantics = [], scalar_prefetch = 0 : i64, scratch_operands = 0 : i64, tpu.core_type = #tpu.core_type<tc>} {
    %c0 = arith.constant 0 : index
    %c0_0 = arith.constant 0 : index
    %0 = vector.load %arg0[%c0, %c0_0] : memref<8x32xf32, #tpu.memory_space<vmem>>, vector<8x32xf32>
    %c0_1 = arith.constant 0 : index
    %c0_2 = arith.constant 0 : index
    %1 = vector.load %arg1[%c0_1, %c0_2] : memref<32x128xf32, #tpu.memory_space<vmem>>, vector<32x128xf32>
    %cst = arith.constant dense<0.000000e+00> : vector<8x128xf32>
    %2 = tpu.matmul %0, %1, %cst {dimension_numbers = #tpu.dot_dimension_numbers<[1], [0], [0], [1], [0, 0, 1, 1], [], []>} : vector<8x32xf32>, vector<32x128xf32>, vector<8x128xf32> -> vector<8x128xf32>
    %c0_3 = arith.constant 0 : index
    %c0_4 = arith.constant 0 : index
    %3 = vector.load %arg2[%c0_3, %c0_4] : memref<2x128xf32, #tpu.memory_space<vmem>>, vector<2x128xf32>
    %4 = vector.extract_strided_slice %3 {offsets = [0, 0], sizes = [1, 128], strides = [1, 1]} : vector<2x128xf32> to vector<1x128xf32>
    %5 = vector.extract_strided_slice %3 {offsets = [1, 0], sizes = [1, 128], strides = [1, 1]} : vector<2x128xf32> to vector<1x128xf32>
    %cst_5 = arith.constant dense<0.000000e+00> : vector<128xf32>
    %6 = vector.multi_reduction <add>, %2, %cst_5 [0] : vector<8x128xf32> to vector<128xf32>
    %7 = vector.shape_cast %6 : vector<128xf32> to vector<1x128xf32>
    %8 = arith.mulf %2, %2 : vector<8x128xf32>
    %cst_6 = arith.constant dense<0.000000e+00> : vector<128xf32>
    %9 = vector.multi_reduction <add>, %8, %cst_6 [0] : vector<8x128xf32> to vector<128xf32>
    %10 = vector.shape_cast %9 : vector<128xf32> to vector<1x128xf32>
    %cst_7 = arith.constant 1.250000e-01 : f32
    %11 = vector.broadcast %cst_7 : f32 to vector<1x128xf32>
    %12 = arith.mulf %7, %11 : vector<1x128xf32>
    %cst_8 = arith.constant 1.250000e-01 : f32
    %13 = vector.broadcast %cst_8 : f32 to vector<1x128xf32>
    %14 = arith.mulf %10, %13 : vector<1x128xf32>
    %15 = arith.mulf %12, %12 : vector<1x128xf32>
    %16 = arith.subf %14, %15 : vector<1x128xf32>
    %cst_9 = arith.constant 0.000000e+00 : f32
    %17 = vector.broadcast %cst_9 : f32 to vector<1x128xf32>
    %18 = arith.maximumf %16, %17 : vector<1x128xf32>
    %19 = vector.broadcast %12 : vector<1x128xf32> to vector<8x128xf32>
    %20 = arith.subf %2, %19 : vector<8x128xf32>
    %cst_10 = arith.constant 9.99999974E-6 : f32
    %21 = vector.broadcast %cst_10 : f32 to vector<1x128xf32>
    %22 = arith.addf %18, %21 : vector<1x128xf32>
    %23 = math.rsqrt %22 : vector<1x128xf32>
    %24 = vector.broadcast %23 : vector<1x128xf32> to vector<8x128xf32>
    %25 = arith.mulf %20, %24 : vector<8x128xf32>
    %26 = vector.broadcast %4 : vector<1x128xf32> to vector<8x128xf32>
    %27 = arith.mulf %25, %26 : vector<8x128xf32>
    %28 = vector.broadcast %5 : vector<1x128xf32> to vector<8x128xf32>
    %29 = arith.addf %27, %28 : vector<8x128xf32>
    %cst_11 = arith.constant 0.000000e+00 : f32
    %30 = vector.broadcast %cst_11 : f32 to vector<8x128xf32>
    %31 = arith.maximumf %29, %30 : vector<8x128xf32>
    %c0_12 = arith.constant 0 : index
    %c0_13 = arith.constant 0 : index
    %32 = vector.load %arg3[%c0_12, %c0_13] : memref<128x128xf32, #tpu.memory_space<vmem>>, vector<128x128xf32>
    %cst_14 = arith.constant dense<0.000000e+00> : vector<8x128xf32>
    %33 = tpu.matmul %31, %32, %cst_14 {dimension_numbers = #tpu.dot_dimension_numbers<[1], [0], [0], [1], [0, 0, 1, 1], [], []>} : vector<8x128xf32>, vector<128x128xf32>, vector<8x128xf32> -> vector<8x128xf32>
    %cst_15 = arith.constant dense<0.000000e+00> : vector<128xf32>
    %34 = vector.multi_reduction <add>, %33, %cst_15 [0] : vector<8x128xf32> to vector<128xf32>
    %35 = vector.shape_cast %34 : vector<128xf32> to vector<1x128xf32>
    %36 = arith.mulf %33, %33 : vector<8x128xf32>
    %cst_16 = arith.constant dense<0.000000e+00> : vector<128xf32>
    %37 = vector.multi_reduction <add>, %36, %cst_16 [0] : vector<8x128xf32> to vector<128xf32>
    %38 = vector.shape_cast %37 : vector<128xf32> to vector<1x128xf32>
    %cst_17 = arith.constant 1.250000e-01 : f32
    %39 = vector.broadcast %cst_17 : f32 to vector<1x128xf32>
    %40 = arith.mulf %35, %39 : vector<1x128xf32>
    %cst_18 = arith.constant 1.250000e-01 : f32
    %41 = vector.broadcast %cst_18 : f32 to vector<1x128xf32>
    %42 = arith.mulf %38, %41 : vector<1x128xf32>
    %43 = arith.mulf %40, %40 : vector<1x128xf32>
    %44 = arith.subf %42, %43 : vector<1x128xf32>
    %cst_19 = arith.constant 0.000000e+00 : f32
    %45 = vector.broadcast %cst_19 : f32 to vector<1x128xf32>
    %46 = arith.maximumf %44, %45 : vector<1x128xf32>
    %47 = vector.broadcast %40 : vector<1x128xf32> to vector<8x128xf32>
    %48 = arith.subf %33, %47 : vector<8x128xf32>
    %cst_20 = arith.constant 9.99999974E-6 : f32
    %49 = vector.broadcast %cst_20 : f32 to vector<1x128xf32>
    %50 = arith.addf %46, %49 : vector<1x128xf32>
    %51 = math.rsqrt %50 : vector<1x128xf32>
    %52 = vector.broadcast %51 : vector<1x128xf32> to vector<8x128xf32>
    %53 = arith.mulf %48, %52 : vector<8x128xf32>
    %c0_21 = arith.constant 0 : index
    %c0_22 = arith.constant 0 : index
    %54 = vector.load %arg4[%c0_21, %c0_22] : memref<8x128xf32, #tpu.memory_space<vmem>>, vector<8x128xf32>
    tpu.vector_store %arg4[%c0_21, %c0_22], %53 {strides = array<i32>} : memref<8x128xf32, #tpu.memory_space<vmem>>, vector<8x128xf32>,
    return
  }
}

</mosaic_0001>

<bundles_post_ra>
// kernel: two_layer_pooler.1
= control target key start
LH: loop header
LB: loop body
LE: loop exit
PB: predicated region body
PF: predicated region fallthrough
CT: control target
= control target key end

     0   :  { %9 = vsyncpa [#allocation3], 0  ;;  %s417_s0 = inlined_call_operand.hbm [shape: f32[8,32], index: 0, kind: input, shape index: {}]   ;;  %s418_s1 = inlined_call_operand.hbm [shape: f32[32,128], index: 1, kind: input, shape index: {}]   ;;  %s419_s2 = inlined_call_operand.hbm [shape: f32[2,128], index: 2, kind: input, shape index: {}]   ;;  %s420_s3 = inlined_call_operand.hbm [shape: f32[128,128], index: 3, kind: input, shape index: {}]   ;;  %s421_s4 = inlined_call_operand.hbm [shape: f32[8,128], index: 4, kind: output, shape index: {}]  }
   0x1   :  { %10 = vsyncpa [#allocation6], 0 }
   0x2   :  { %11 = vsyncpa [#allocation9], 0  ;;  %s28_s17 = sshll.u32 %s418_s1, 4  ;;  %s29_s17 = int_to_ptr.hbm [resolvable:$true] %s28_s17 }
   0x3   :  { %12 = vsyncpa [#allocation4], 0  ;;  %s370_s18 = smov [#allocation5]   ;;  %s18_s22 = sshll.u32 %s417_s0, 4  ;;  %s19_s22 = int_to_ptr.hbm [resolvable:$true] %s18_s22 }
   0x4   :  { %s30_s19 = sshll.u32 %s370_s18, 4  ;;  %s371_s23 = smov 128   ;;  %s31_s19 = int_to_ptr.vmem [resolvable:$true] %s30_s19 }
   0x5   :  { %s372_s24 = smov 8   ;;  %s373_s25 = smov [#allocation2]  }
   0x6   :  { %36 = dma.hbm_to_vmem [thread:$0]  %s29_s17, 512, %s31_s19, [#allocation6], %s371_s23, %s371_s23, %s372_s24  }
   0x7   :  { %s20_s26 = sshll.u32 %s373_s25, 4  ;;  %s42_s29 = sshll.u32 %s419_s2, 4  ;;  %s21_s26 = int_to_ptr.vmem [resolvable:$true] %s20_s26  ;;  %s43_s29 = int_to_ptr.hbm [resolvable:$true] %s42_s29 }
   0x8   :  { %23 = dma.hbm_to_vmem [thread:$0]  %s19_s22, 128, %s21_s26, [#allocation3]  }
   0x9   :  { %s52_s5 = sshll.u32 %s420_s3, 4  ;;  %s374_s6 = smov [#allocation7]   ;;  %s53_s5 = int_to_ptr.hbm [resolvable:$true] %s52_s5 }
   0xa   :  { %s44_s7 = sshll.u32 %s374_s6, 4  ;;  %s375_s0 = smov [#allocation8]   ;;  %s45_s7 = int_to_ptr.vmem [resolvable:$true] %s44_s7 }
   0xb   :  { %47 = dma.hbm_to_vmem [thread:$0]  %s43_s29, 32, %s45_s7, [#allocation6]  }
   0xc   :  { %s54_s8 = sshll.u32 %s375_s0, 4  ;;  %s55_s8 = int_to_ptr.vmem [resolvable:$true] %s54_s8 }
   0xd   :  { %60 = dma.hbm_to_vmem [thread:$0]  %s53_s5, 2048, %s55_s8, [#allocation9], %s371_s23, %s371_s23, %s372_s24  }
   0xe   :  { %362 = dma.done.wait [#allocation3], 128  }
   0xf   :  { %363 = vsyncadd [#allocation3], 4294967168 }
  0x10   :  { %364 = dma.done.wait [#allocation6], 544  }
  0x11   :  { %365 = vsyncadd [#allocation6], 4294966752 }
  0x12   :  { %366 = dma.done.wait [#allocation9], 2048  }
  0x13   :  { %367 = vsyncadd [#allocation9], 4294965248  ;;  %v81_v0 = vld [vmem:[#allocation5 + $0x18] sm:$0xff]  ;;  %v80_v1 = vld [vmem:[#allocation5 + $0x10] sm:$0xff]  ;;  %vm82_vm0 = vcmask 261120   ;;  %s376_s2 = smov [#allocation10]  }
  0x14   :  { %98 = vmatpush.msra.mxu0 %v81_v0  ;;  %v79_v2 = vld [vmem:[#allocation5 + $0x8] sm:$0xff]  ;;  %v78_v3 = vld [vmem:[#allocation5] sm:$0xff]  ;;  %v77_v4 = vld [vmem:[#allocation2] sm:$0xff]  ;;  %s216_s3 = sshll.u32 %s376_s2, 4  ;;  %s218_s11 = sshll.u32 %s421_s4, 4  ;;  %s217_s3 = int_to_ptr.vmem [resolvable:$true] %s216_s3  ;;  %s219_s11 = int_to_ptr.hbm [resolvable:$true] %s218_s11 }
  0x15   :  { %v158_v5 = vld [vmem:[#allocation8 + $0x78] sm:$0xff]  ;;  %v157_v6 = vld [vmem:[#allocation8 + $0x70] sm:$0xff]  ;;  %v156_v7 = vld [vmem:[#allocation8 + $0x68] sm:$0xff] }
  0x16   :  { %99 = vmatpush.msra.mxu0 %v80_v1  ;;  %159 = vmatpush.msra.mxu1 %v158_v5  ;;  %v155_v8 = vld [vmem:[#allocation8 + $0x60] sm:$0xff]  ;;  %v154_v9 = vld [vmem:[#allocation8 + $0x58] sm:$0xff]  ;;  %v153_v10 = vld [vmem:[#allocation8 + $0x50] sm:$0xff] }
  0x17   :  { %v152_v11 = vld [vmem:[#allocation8 + $0x48] sm:$0xff]  ;;  %v151_v12 = vld [vmem:[#allocation8 + $0x40] sm:$0xff]  ;;  %v150_v16 = vld [vmem:[#allocation8 + $0x38] sm:$0xff] }
  0x18   :  { %100 = vmatpush.msra.mxu0 %v79_v2  ;;  %160 = vmatpush.msra.mxu1 %v157_v6  ;;  %v149_v19 = vld [vmem:[#allocation8 + $0x30] sm:$0xff]  ;;  %v148_v22 = vld [vmem:[#allocation8 + $0x28] sm:$0xff]  ;;  %v147_v25 = vld [vmem:[#allocation8 + $0x20] sm:$0xff] }
  0x19   :  { %v146_v28 = vld [vmem:[#allocation8 + $0x18] sm:$0xff]  ;;  %v145_v29 = vld [vmem:[#allocation8 + $0x10] sm:$0xff]  ;;  %v144_v32 = vld [vmem:[#allocation8 + $0x8] sm:$0xff] }
  0x1a   :  { %101 = vmatpush.msra.mxu0 %v78_v3  ;;  %161 = vmatpush.msra.mxu1 %v156_v7  ;;  %v143_v35 = vld [vmem:[#allocation8] sm:$0xff]  ;;  %v106_v46 = vld [vmem:[#allocation7] sm:$0x3] }
  0x1b   :  { %230 = vmatmul.msk.f32.vlgmr.msra.gmra.mxu0 %vm82_vm0, %v77_v4  ;;  %v138_v49 = vperm.slane %v106_v46, 0  ;;  %v140_v52 = vperm.slane %v106_v46, 1 }
  0x1c   :  { %162 = vmatpush.msra.mxu1 %v155_v8 }
  0x1e   :  { %163 = vmatpush.msra.mxu1 %v154_v9 }
  0x20   :  { %164 = vmatpush.msra.mxu1 %v153_v10 }
  0x22   :  { %165 = vmatpush.msra.mxu1 %v152_v11 }
  0x24   :  { %166 = vmatpush.msra.mxu1 %v151_v12 }
  0x26   :  { %167 = vmatpush.msra.mxu1 %v150_v16 }
  0x28   :  { %168 = vmatpush.msra.mxu1 %v149_v19 }
  0x2a   :  { %169 = vmatpush.msra.mxu1 %v148_v22 }
  0x2c   :  { %170 = vmatpush.msra.mxu1 %v147_v25 }
  0x2e   :  { %171 = vmatpush.msra.mxu1 %v146_v28 }
  0x30   :  { %172 = vmatpush.msra.mxu1 %v145_v29 }
  0x32   :  { %173 = vmatpush.msra.mxu1 %v144_v32 }
  0x34   :  { %174 = vmatpush.msra.mxu1 %v143_v35 }
  0x98   :  { %v103_v13 = vpop.f32.mrf.mxu0 }
  0x99   :  { %v107_v14 = vrot.slane %v103_v13, 4  ;;  %v113_v15 = vmul.f32 %v103_v13, %v103_v13 }
  0x9b   :  { %v108_v17 = vadd.f32 %v107_v14, %v103_v13  ;;  %v114_v18 = vrot.slane %v113_v15, 4 }
  0x9d   :  { %v109_v20 = vrot.slane %v108_v17, 2  ;;  %v115_v21 = vadd.f32 %v114_v18, %v113_v15 }
  0x9f   :  { %v110_v23 = vadd.f32 %v109_v20, %v108_v17  ;;  %v116_v24 = vrot.slane %v115_v21, 2 }
  0xa1   :  { %v111_v26 = vrot.slane %v110_v23, 1  ;;  %v117_v27 = vadd.f32 %v116_v24, %v115_v21 }
  0xa3   :  { %v112_v30 = vadd.f32 %v111_v26, %v110_v23  ;;  %v118_v31 = vrot.slane %v117_v27, 1 }
  0xa5   :  { %v119_v33 = vadd.f32 %v118_v31, %v117_v27  ;;  %v120_v34 = vmul.f32 0.125, %v112_v30 }
  0xa7   :  { %v121_v36 = vmul.f32 0.125, %v119_v33  ;;  %v122_v37 = vmul.f32 %v120_v34, %v120_v34  ;;  %v125_v48 = vsub.f32 %v103_v13, %v120_v34 }
  0xa9   :  { %v123_v38 = vsub.f32 %v121_v36, %v122_v37 }
  0xab   :  { %v124_v39 = vmax.f32 %v123_v38, 0.0 }
  0xad   :  { %v126_v40 = vadd.f32 1e-05, %v124_v39 }
  0xaf   :  { %238 = vrsqrt.f32 %v126_v40  ;;  %vm133_vm2 = vweird.f32 %v126_v40 }
  0xb5   :  { %v239_v41 = vpop.eup %238 }
  0xb6   :  { %v128_v42 = vmul.f32 %v239_v41, %v126_v40  ;;  %vm134_vm1 = vweird.f32 %v239_v41 }
  0xb7   :  { %vm135_vm3 = vmor %vm133_vm2, %vm134_vm1 }
  0xb8   :  { %v129_v43 = vmul.f32 %v239_v41, %v128_v42 }
  0xba   :  { %v130_v44 = vmul.f32 0.5, %v129_v43 }
  0xbc   :  { %v131_v45 = vsub.f32 1.5, %v130_v44 }
  0xbe   :  { %v132_v47 = vmul.f32 %v239_v41, %v131_v45 }
  0xc0   :  { %v136_v50 = vsel %vm135_vm3, %v239_v41, %v132_v47 }
  0xc1   :  { %v137_v51 = vmul.f32 %v136_v50, %v125_v48 }
  0xc3   :  { %v139_v53 = vmul.f32 %v138_v49, %v137_v51 }
  0xc5   :  { %v141_v54 = vadd.f32 %v140_v52, %v139_v53 }
  0xc7   :  { %v142_v55 = vmax.f32 %v141_v54, 0.0 }
  0xc9   :  { %175 = vmatmul.f32.vlgmr.msra.gmra.mxu1 %v142_v55 }
 0x146   :  { %v176_v56 = vpop.f32.mrf.mxu1 }
 0x147   :  { %v179_v57 = vrot.slane %v176_v56, 4  ;;  %v185_v58 = vmul.f32 %v176_v56, %v176_v56 }
 0x149   :  { %v180_v59 = vadd.f32 %v179_v57, %v176_v56  ;;  %v186_v60 = vrot.slane %v185_v58, 4 }
 0x14b   :  { %v181_v61 = vrot.slane %v180_v59, 2  ;;  %v187_v62 = vadd.f32 %v186_v60, %v185_v58 }
 0x14d   :  { %v182_v63 = vadd.f32 %v181_v61, %v180_v59  ;;  %v188_v0 = vrot.slane %v187_v62, 2 }
 0x14f   :  { %v183_v1 = vrot.slane %v182_v63, 1  ;;  %v189_v2 = vadd.f32 %v188_v0, %v187_v62 }
 0x151   :  { %v184_v3 = vadd.f32 %v183_v1, %v182_v63  ;;  %v190_v4 = vrot.slane %v189_v2, 1 }
 0x153   :  { %v191_v5 = vadd.f32 %v190_v4, %v189_v2  ;;  %v192_v6 = vmul.f32 0.125, %v184_v3 }
 0x155   :  { %v193_v7 = vmul.f32 0.125, %v191_v5  ;;  %v194_v8 = vmul.f32 %v192_v6, %v192_v6  ;;  %v197_v18 = vsub.f32 %v176_v56, %v192_v6 }
 0x157   :  { %v195_v9 = vsub.f32 %v193_v7, %v194_v8 }
 0x159   :  { %v196_v10 = vmax.f32 %v195_v9, 0.0 }
 0x15b   :  { %v198_v11 = vadd.f32 1e-05, %v196_v10 }
 0x15d   :  { %240 = vrsqrt.f32 %v198_v11  ;;  %vm205_vm5 = vweird.f32 %v198_v11 }
 0x163   :  { %v241_v12 = vpop.eup %240 }
 0x164   :  { %v200_v13 = vmul.f32 %v241_v12, %v198_v11  ;;  %vm206_vm4 = vweird.f32 %v241_v12 }
 0x165   :  { %vm207_vm6 = vmor %vm205_vm5, %vm206_vm4 }
 0x166   :  { %v201_v14 = vmul.f32 %v241_v12, %v200_v13 }
 0x168   :  { %v202_v15 = vmul.f32 0.5, %v201_v14 }
 0x16a   :  { %v203_v16 = vsub.f32 1.5, %v202_v15 }
 0x16c   :  { %v204_v17 = vmul.f32 %v241_v12, %v203_v16 }
 0x16e   :  { %v208_v19 = vsel %vm207_vm6, %v241_v12, %v204_v17 }
 0x16f   :  { %v209_v20 = vmul.f32 %v208_v19, %v197_v18 }
 0x171   :  { %210 = vst [vmem:[#allocation10] sm:$0xff] %v209_v20 }
 0x172   :  { %221 = dma.vmem_to_hbm [thread:$0]  %s217_s3, 128, %s219_s11, [#allocation4]  }
 0x173   :  { %368 = dma.done.wait [#allocation4], 128  }
 0x174   :  { %369 = vsyncadd [#allocation4], 4294967168 }
 0x175   :  { %226 = vsyncpa [#allocation3], 1 }
 0x176   :  { %227 = vsyncpa [#allocation6], 1 }
 0x177   :  { %228 = vsyncpa [#allocation9], 1 }
 0x178   :  { %229 = vsyncpa [#allocation4], 1 }

</bundles_post_ra>
